<compile_context>
chip_gen: v7x
topology: tpu7x:2x2x1
jax: 0.10.0
libtpu: 0.0.40
codegen_flags: <defaults>
</compile_context>

<pallas_src>
import math

import jax
import jax.numpy as jnp
from jax.experimental import pallas as pl
from jax.experimental.pallas import tpu as pltpu

EPS = 1e-5
_ROW_TILE_BYTES = 2 * 1024 * 1024   # per-buffer tile budget (safe even for v5e's 16 MiB scoped VMEM)
_MAX_ROW_TILE = 1024                # rows; diminishing returns beyond ~512-1024


# ---------------------------------------------------------------------------
# Kernel 1: per-lane sum and sum-of-squares, accumulated over row tiles.
# Grid = (n_splits, tiles_per_split); each split writes its own partial block.
# ---------------------------------------------------------------------------
def _stats_kernel(x_ref, sum_ref, sumsq_ref):
    @pl.when(pl.program_id(1) == 0)
    def _():
        sum_ref[...] = jnp.zeros_like(sum_ref)
        sumsq_ref[...] = jnp.zeros_like(sumsq_ref)

    x = x_ref[...].astype(jnp.float32)                       # (row_tile, W)
    sum_ref[...] += jnp.sum(x, axis=0, keepdims=True)[None]   # (1, 1, W)
    sumsq_ref[...] += jnp.sum(x * x, axis=0, keepdims=True)[None]


# ---------------------------------------------------------------------------
# Kernel 2: y = x * scale + bias   (scale/bias precomputed once, packed as (2, W))
# ---------------------------------------------------------------------------
def _normalize_kernel(sb_ref, x_ref, o_ref):
    x = x_ref[...].astype(jnp.float32)                       # (row_tile, W)
    o_ref[...] = (x * sb_ref[0:1, :] + sb_ref[1:2, :]).astype(o_ref.dtype)


# ---------------------------------------------------------------------------
# Tiling heuristics
# ---------------------------------------------------------------------------
def _choose_packing(m_rows, channels, target_lanes=512, max_lanes=2048):
    """How many consecutive rows to pack into the lane dimension (k*C lanes)."""
    if channels % 128 == 0:
        return 1
    k0 = 128 // math.gcd(channels, 128)      # smallest k with (k*C) % 128 == 0
    w0 = k0 * channels
    if w0 > max_lanes:
        return 1                             # packing would make tiles absurdly wide
    widen = max(1, target_lanes // w0)       # widen toward ~512 lanes
    while widen > 1 and k0 * widen > max(k0, m_rows):
        widen //= 2
    return k0 * widen


def _choose_row_tile(mg_needed, width, itemsize):
    rt = _ROW_TILE_BYTES // max(1, width * itemsize)
    rt = min(_MAX_ROW_TILE, rt)
    rt = max(8, (rt // 8) * 8)
    rt = min(rt, ((mg_needed + 7) // 8) * 8)  # don't tile beyond the data
    return rt


# ---------------------------------------------------------------------------
# Wrapper
# ---------------------------------------------------------------------------
def graph_batch_norm(x, gamma, beta):
    """x: [batch, num_nodes, channels]; gamma/beta: [channels]. Returns x-shaped output.

    Matches torch.nn.BatchNorm1d in training mode applied to x.view(B*N, C)
    (biased batch variance, eps=1e-5).
    """
    # TODO(synk): running_mean/running_var momentum updates and eval-mode
    # normalization (BatchNorm1d buffers) are training-state side effects and
    # are not implemented here.
    batch, num_nodes, channels = x.shape
    m_rows = batch * num_nodes

    # ---- layout: pack rows into lanes when channels < 128 ----------------
    k = _choose_packing(m_rows, channels)
    width = k * channels
    mg_needed = pl.cdiv(m_rows, k)
    itemsize = jnp.dtype(x.dtype).itemsize
    row_tile = _choose_row_tile(mg_needed, width, itemsize)
    mg = pl.cdiv(mg_needed, row_tile) * row_tile
    n_tiles = mg // row_tile
    n_splits = 2 if (n_tiles >= 2 and n_tiles % 2 == 0) else 1   # v7x: one split per TC
    tiles_per_split = n_tiles // n_splits

    x2d = x.reshape(m_rows, channels)
    pad_rows = mg * k - m_rows
    if pad_rows:
        # Zero rows contribute 0 to sum/sumsq; mean/var divide by the true m_rows.
        x2d = jnp.pad(x2d, ((0, pad_rows), (0, 0)))
    xp = x2d.reshape(mg, width)

    # ---- pass 1: partial per-lane sum / sumsq --------------------------------
    sums_p, sumsqs_p = pl.pallas_call(
        _stats_kernel,
        out_shape=(
            jax.ShapeDtypeStruct((n_splits, 1, width), jnp.float32),
            jax.ShapeDtypeStruct((n_splits, 1, width), jnp.float32),
        ),
        grid_spec=pltpu.PrefetchScalarGridSpec(
            num_scalar_prefetch=0,
            grid=(n_splits, tiles_per_split),
            in_specs=[
                pl.BlockSpec((row_tile, width),
                             lambda s, j: (s * tiles_per_split + j, 0)),
            ],
            out_specs=(
                pl.BlockSpec((1, 1, width), lambda s, j: (s, 0, 0)),
                pl.BlockSpec((1, 1, width), lambda s, j: (s, 0, 0)),
            ),
        ),
        compiler_params=pltpu.CompilerParams(
            dimension_semantics=("parallel", "arbitrary")),
    )(xp)

    # ---- tiny glue: fold partials/lane-groups, compute scale & bias once -----
    sums = sums_p.sum(axis=(0, 1)).reshape(k, channels).sum(axis=0)       # (C,)
    sumsqs = sumsqs_p.sum(axis=(0, 1)).reshape(k, channels).sum(axis=0)   # (C,)
    mean = sums / m_rows
    var = jnp.maximum(sumsqs / m_rows - mean * mean, 0.0)   # biased var, clamped
    inv_std = jax.lax.rsqrt(var + EPS)
    scale = gamma.astype(jnp.float32) * inv_std              # (C,)
    bias = beta.astype(jnp.float32) - mean * scale            # (C,)
    sb = jnp.stack([jnp.tile(scale, k), jnp.tile(bias, k)], axis=0)       # (2, W)

    # ---- pass 2: y = x*scale + bias ------------------------------------------
    yp = pl.pallas_call(
        _normalize_kernel,
        out_shape=jax.ShapeDtypeStruct((mg, width), x.dtype),
        grid_spec=pltpu.PrefetchScalarGridSpec(
            num_scalar_prefetch=0,
            grid=(n_tiles,),
            in_specs=[
                pl.BlockSpec((2, width), lambda i: (0, 0)),          # scale/bias
                pl.BlockSpec((row_tile, width), lambda i: (i, 0)),   # x
            ],
            out_specs=pl.BlockSpec((row_tile, width), lambda i: (i, 0)),
        ),
        compiler_params=pltpu.CompilerParams(
            dimension_semantics=("parallel",)),
    )(sb, xp)

    y2d = yp.reshape(mg * k, channels)
    if pad_rows:
        y2d = y2d[:m_rows]
    return y2d.reshape(batch, num_nodes, channels)


if __name__ == "__main__":
    batch, num_nodes, channels = 2, 16, 8   # M = 32 rows

    key = jax.random.PRNGKey(0)
    x = jax.random.normal(key, (batch, num_nodes, channels), dtype=jnp.float32)

    # BatchNorm1d(no_channels) deterministic init: weight = 1, bias = 0.
    gamma = jnp.ones((channels,), dtype=jnp.float32)
    beta = jnp.zeros((channels,), dtype=jnp.float32)

    y = graph_batch_norm(x, gamma, beta)
    y = jax.block_until_ready(y)

    # Reference (pure JAX) check of training-mode BatchNorm1d semantics.
    x2d = x.reshape(batch * num_nodes, channels)
    mean = x2d.mean(axis=0, keepdims=True)
    var = x2d.var(axis=0, keepdims=True)  # biased variance
    ref = ((x2d - mean) / jnp.sqrt(var + EPS) * gamma + beta).reshape(x.shape)

    assert y.shape == x.shape
    assert jnp.allclose(y, ref, atol=1e-4, rtol=1e-4), "mismatch vs reference"
    print("KERNEL_OK")
</pallas_src>

<mosaic_0001>
module attributes {stable_mosaic.version = 11 : i64} {
  func.func @_stats_kernel(%arg0: i32, %arg1: i32, %arg2: memref<8x256xf32, #tpu.memory_space<vmem>>, %arg3: memref<1x1x256xf32, #tpu.memory_space<vmem>>, %arg4: memref<1x1x256xf32, #tpu.memory_space<vmem>>) attributes {dimension_semantics = [#tpu.dimension_semantics<parallel>, #tpu.dimension_semantics<arbitrary>], iteration_bounds = array<i64: 1, 1>, scalar_prefetch = 0 : i64, scratch_operands = 0 : i64, tpu.core_type = #tpu.core_type<tc>, window_params = [{transform_indices = @transform_0, window_bounds = array<i64: 8, 256>}, {transform_indices = @transform_1, window_bounds = array<i64: 1, 1, 256>}, {transform_indices = @transform_2, window_bounds = array<i64: 1, 1, 256>}]} {
    %c0_i32 = arith.constant 0 : i32
    %0 = arith.cmpi eq, %arg1, %c0_i32 : i32
    %1 = arith.extui %0 : i1 to i32
    %c0_i32_0 = arith.constant 0 : i32
    %2 = arith.cmpi ne, %1, %c0_i32_0 : i32
    scf.if %2 {
      %cst_15 = arith.constant 0.000000e+00 : f32
      %17 = vector.broadcast %cst_15 : f32 to vector<1x1x256xf32>
      %c0_16 = arith.constant 0 : index
      %c0_17 = arith.constant 0 : index
      %c0_18 = arith.constant 0 : index
      %18 = vector.load %arg3[%c0_16, %c0_17, %c0_18] : memref<1x1x256xf32, #tpu.memory_space<vmem>>, vector<1x1x256xf32>
      tpu.vector_store %arg3[%c0_16, %c0_17, %c0_18], %17 {strides = array<i32>} : memref<1x1x256xf32, #tpu.memory_space<vmem>>, vector<1x1x256xf32>,
      %cst_19 = arith.constant 0.000000e+00 : f32
      %19 = vector.broadcast %cst_19 : f32 to vector<1x1x256xf32>
      %c0_20 = arith.constant 0 : index
      %c0_21 = arith.constant 0 : index
      %c0_22 = arith.constant 0 : index
      %20 = vector.load %arg4[%c0_20, %c0_21, %c0_22] : memref<1x1x256xf32, #tpu.memory_space<vmem>>, vector<1x1x256xf32>
      tpu.vector_store %arg4[%c0_20, %c0_21, %c0_22], %19 {strides = array<i32>} : memref<1x1x256xf32, #tpu.memory_space<vmem>>, vector<1x1x256xf32>,
    } else {
    }
    %c0 = arith.constant 0 : index
    %c0_1 = arith.constant 0 : index
    %3 = vector.load %arg2[%c0, %c0_1] : memref<8x256xf32, #tpu.memory_space<vmem>>, vector<8x256xf32>
    %c0_2 = arith.constant 0 : index
    %c0_3 = arith.constant 0 : index
    %c0_4 = arith.constant 0 : index
    %4 = vector.load %arg3[%c0_2, %c0_3, %c0_4] : memref<1x1x256xf32, #tpu.memory_space<vmem>>, vector<1x1x256xf32>
    %cst = arith.constant dense<0.000000e+00> : vector<256xf32>
    %5 = vector.multi_reduction <add>, %3, %cst [0] : vector<8x256xf32> to vector<256xf32>
    %6 = vector.shape_cast %5 : vector<256xf32> to vector<1x256xf32>
    %7 = vector.shape_cast %6 : vector<1x256xf32> to vector<1x1x256xf32>
    %8 = arith.addf %4, %7 : vector<1x1x256xf32>
    %c0_5 = arith.constant 0 : index
    %c0_6 = arith.constant 0 : index
    %c0_7 = arith.constant 0 : index
    %9 = vector.load %arg3[%c0_5, %c0_6, %c0_7] : memref<1x1x256xf32, #tpu.memory_space<vmem>>, vector<1x1x256xf32>
    tpu.vector_store %arg3[%c0_5, %c0_6, %c0_7], %8 {strides = array<i32>} : memref<1x1x256xf32, #tpu.memory_space<vmem>>, vector<1x1x256xf32>,
    %c0_8 = arith.constant 0 : index
    %c0_9 = arith.constant 0 : index
    %c0_10 = arith.constant 0 : index
    %10 = vector.load %arg4[%c0_8, %c0_9, %c0_10] : memref<1x1x256xf32, #tpu.memory_space<vmem>>, vector<1x1x256xf32>
    %11 = arith.mulf %3, %3 : vector<8x256xf32>
    %cst_11 = arith.constant dense<0.000000e+00> : vector<256xf32>
    %12 = vector.multi_reduction <add>, %11, %cst_11 [0] : vector<8x256xf32> to vector<256xf32>
    %13 = vector.shape_cast %12 : vector<256xf32> to vector<1x256xf32>
    %14 = vector.shape_cast %13 : vector<1x256xf32> to vector<1x1x256xf32>
    %15 = arith.addf %10, %14 : vector<1x1x256xf32>
    %c0_12 = arith.constant 0 : index
    %c0_13 = arith.constant 0 : index
    %c0_14 = arith.constant 0 : index
    %16 = vector.load %arg4[%c0_12, %c0_13, %c0_14] : memref<1x1x256xf32, #tpu.memory_space<vmem>>, vector<1x1x256xf32>
    tpu.vector_store %arg4[%c0_12, %c0_13, %c0_14], %15 {strides = array<i32>} : memref<1x1x256xf32, #tpu.memory_space<vmem>>, vector<1x1x256xf32>,
    return
  }
  func.func @transform_0(%arg0: i32, %arg1: i32) -> (i32, i32) {
    %c1_i32 = arith.constant 1 : i32
    %0 = arith.muli %arg0, %c1_i32 : i32
    %1 = arith.addi %0, %arg1 : i32
    %c0_i32 = arith.constant 0 : i32
    %c0_i32_0 = arith.constant 0 : i32
    return %1, %c0_i32 : i32, i32
  }
  func.func @transform_1(%arg0: i32, %arg1: i32) -> (i32, i32, i32) {
    %c0_i32 = arith.constant 0 : i32
    %c0_i32_0 = arith.constant 0 : i32
    %c0_i32_1 = arith.constant 0 : i32
    return %arg0, %c0_i32, %c0_i32_0 : i32, i32, i32
  }
  func.func @transform_2(%arg0: i32, %arg1: i32) -> (i32, i32, i32) {
    %c0_i32 = arith.constant 0 : i32
    %c0_i32_0 = arith.constant 0 : i32
    %c0_i32_1 = arith.constant 0 : i32
    return %arg0, %c0_i32, %c0_i32_0 : i32, i32, i32
  }
}

</mosaic_0001>

<bundles_post_ra>
// kernel: tpu_custom_call.1
= control target key start
LH: loop header
LB: loop body
LE: loop exit
PB: predicated region body
PF: predicated region fallthrough
CT: control target
= control target key end

     0   :  { %8 = vsyncpa [#allocation3], 0  ;;  %s287_s0 = inlined_call_operand.hbm [shape: f32[8,256], index: 0, kind: input, shape index: {}]   ;;  %s288_s1 = inlined_call_operand.hbm [shape: f32[1,1,256], index: 1, kind: output, shape index: {0}]   ;;  %s289_s2 = inlined_call_operand.hbm [shape: f32[1,1,256], index: 2, kind: output, shape index: {1}]  }
   0x1   :  { %9 = vsyncpa [#allocation4], 0 }
   0x2   :  { %10 = vsyncpa [#allocation7], 0  ;;  %s219_s9 = smov [#allocation2]   ;;  %s147_s13 = scalar_lea.hbm %s287_s0, 256 }
   0x3   :  { %s21_s10 = sshll.u32 %s219_s9, 4  ;;  %p148_p0 = scmp.ne.s32.totalorder %s287_s0, %s147_s13  ;;  %s22_s10 = int_to_ptr.vmem [resolvable:$true] %s21_s10 }
   0x4   :  { %p151_p1 = scmp.lt.u32.totalorder %s147_s13, %s287_s0 }
   0x6   :  { %p153_p2 = pnand %p151_p1, %p148_p0 }
   0x8   :  { %156 = shalt.err (!%p153_p2)
}
   0x9   :  { %s157_s18 = scalar_lea.vmem %s22_s10, 256  ;;  %p162_p4 = scmp.lt.s32.totalorder %s22_s10, %s22_s10 }
   0xa   :  { %p158_p3 = scmp.ne.s32.totalorder %s22_s10, %s157_s18  ;;  %p163_p5 = scmp.lt.s32.totalorder %s157_s18, %s157_s18 }
   0xc   :  { %p164_p6 = por %p163_p5, %p162_p4 }
   0xe   :  { %p165_p7 = pnand %p164_p6, %p158_p3 }
  0x10   :  { %168 = shalt.err (!%p165_p7)
}
  0x11   :  { %24 = dma.hbm_to_vmem [thread:$0]  %s287_s0, 256, %s22_s10, [#allocation3]  }
  0x12   :  { %213 = dma.done.wait [#allocation3], 256  }
  0x13   :  { %214 = vsyncadd [#allocation3], 4294967040  ;;  %v33_v0 = vlaneseq  ;;  %v220_v2 = vmov 0.0   ;;  %v39_v3 = vld [vmem:[#allocation2] sm:$0xff]  ;;  %v40_v4 = vld [vmem:[#allocation2 + $0x8] sm:$0xff]  ;;  %s222_s0 = smov [#allocation5]  }
  0x14   :  { %v42_v5 = vrot.slane %v39_v3, 4  ;;  %v48_v6 = vrot.slane %v40_v4, 4  ;;  %v79_v7 = vmul.f32 %v39_v3, %v39_v3  ;;  %v80_v8 = vmul.f32 %v40_v4, %v40_v4  ;;  %s119_s21 = sshll.u32 %s222_s0, 4  ;;  %s223_s22 = smov [#allocation6]   ;;  %s120_s21 = int_to_ptr.vmem [resolvable:$true] %s119_s21 }
  0x15   :  { %vm251_vm0 = vcmp.lt.s32.totalorder %v33_v0, 256  ;;  %v221_v9 = vmov 1966171168   ;;  %v61_v20 = vshrl.u32 %v33_v0, 7  ;;  %s129_s23 = sshll.u32 %s223_s22, 4  ;;  %s169_s24 = scalar_lea.vmem %s120_s21, 32  ;;  %s130_s23 = int_to_ptr.vmem [resolvable:$true] %s129_s23 }
  0x16   :  { %37 = vst.msk [vmem:[#allocation5] sm:$0x3] %vm251_vm0, %v220_v2  ;;  %38 = vst.msk [vmem:[#allocation6] sm:$0x3] %vm251_vm0, %v220_v2  ;;  %v58_v10 = vunpack.c.l.s4 %v221_v9  ;;  %v43_v11 = vadd.f32 %v42_v5, %v39_v3  ;;  %v49_v12 = vadd.f32 %v48_v6, %v40_v4  ;;  %v81_v13 = vrot.slane %v79_v7, 4  ;;  %p170_p8 = scmp.ne.s32.totalorder %s120_s21, %s169_s24  ;;  %p174_p9 = scmp.lt.s32.totalorder %s120_s21, %s120_s21 }
  0x17   :  { %v87_v14 = vrot.slane %v80_v8, 4  ;;  %p175_p10 = scmp.lt.s32.totalorder %s169_s24, %s169_s24 }
  0x18   :  { %v44_v15 = vrot.slane %v43_v11, 2  ;;  %v50_v16 = vrot.slane %v49_v12, 2  ;;  %v82_v17 = vadd.f32 %v81_v13, %v79_v7  ;;  %v59_v19 = vunpack.c.0.s8 %v58_v10 }
  0x19   :  { %v88_v18 = vadd.f32 %v87_v14, %v80_v8  ;;  %p176_p11 = por %p175_p10, %p174_p9 }
  0x1a   :  { %v45_v21 = vadd.f32 %v44_v15, %v43_v11  ;;  %v51_v22 = vadd.f32 %v50_v16, %v49_v12  ;;  %v83_v23 = vrot.slane %v82_v17, 2  ;;  %v62_v29 = vsub.s32 %v59_v19, %v61_v20 }
  0x1b   :  { %v89_v24 = vrot.slane %v88_v18, 2  ;;  %p177_p12 = pnand %p176_p11, %p170_p8 }
  0x1c   :  { %v46_v25 = vrot.slane %v45_v21, 1  ;;  %v52_v26 = vrot.slane %v51_v22, 1  ;;  %v84_v27 = vadd.f32 %v83_v23, %v82_v17 }
  0x1d   :  { %v90_v28 = vadd.f32 %v89_v24, %v88_v18  ;;  %v41_v39 = vld [vmem:[#allocation5] sm:$0x3]  ;;  %v78_v42 = vld [vmem:[#allocation6] sm:$0x3] }
  0x1e   :  { %v47_v30 = vadd.f32 %v46_v25, %v45_v21  ;;  %v53_v31 = vadd.f32 %v52_v26, %v51_v22  ;;  %v85_v32 = vrot.slane %v84_v27, 1 }
  0x1f   :  { %v91_v33 = vrot.slane %v90_v28, 1 }
  0x20   :  { %v56_v34 = vcombine.low %v47_v30, %v53_v31  ;;  %v86_v35 = vadd.f32 %v85_v32, %v84_v27 }
  0x21   :  { %v92_v36 = vadd.f32 %v91_v33, %v90_v28 }
  0x22   :  { %v63_v37 = vrot.slane %v56_v34, %v62_v29 }
  0x23   :  { %v95_v38 = vcombine.low %v86_v35, %v92_v36 }
  0x24   :  { %v70_v40 = vrot.slane %v63_v37, %v62_v29 }
  0x25   :  { %v102_v41 = vrot.slane %v95_v38, %v62_v29 }
  0x26   :  { %v72_v43 = vadd.f32 %v70_v40, %v41_v39 }
  0x27   :  { %v109_v44 = vrot.slane %v102_v41, %v62_v29 }
  0x28   :  { %77 = vst.msk [vmem:[#allocation5] sm:$0x3] %vm251_vm0, %v72_v43 }
  0x29   :  { %v111_v45 = vadd.f32 %v109_v44, %v78_v42 }
  0x2a   :  { %180 = shalt.err (!%p177_p12)
}
  0x2b   :  { %s181_s27 = scalar_lea.hbm %s288_s1, 32 }
  0x2c   :  { %p182_p13 = scmp.ne.s32.totalorder %s288_s1, %s181_s27  ;;  %p185_p0 = scmp.lt.u32.totalorder %s181_s27, %s288_s1 }
  0x2e   :  { %p187_p1 = pnand %p185_p0, %p182_p13 }
  0x30   :  { %190 = shalt.err (!%p187_p1)
}
  0x31   :  { %122 = dma.vmem_to_hbm [thread:$0]  %s120_s21, 32, %s288_s1, [#allocation4]   ;;  %112 = vst.msk [vmem:[#allocation6] sm:$0x3] %vm251_vm0, %v111_v45 }
  0x32   :  { %s191_s6 = scalar_lea.vmem %s130_s23, 32  ;;  %p196_p3 = scmp.lt.s32.totalorder %s130_s23, %s130_s23 }
  0x33   :  { %p192_p2 = scmp.ne.s32.totalorder %s130_s23, %s191_s6  ;;  %p197_p4 = scmp.lt.s32.totalorder %s191_s6, %s191_s6 }
  0x35   :  { %p198_p5 = por %p197_p4, %p196_p3 }
  0x37   :  { %p199_p6 = pnand %p198_p5, %p192_p2 }
  0x39   :  { %202 = shalt.err (!%p199_p6)
}
  0x3a   :  { %s203_s9 = scalar_lea.hbm %s289_s2, 32 }
  0x3b   :  { %p204_p7 = scmp.ne.s32.totalorder %s289_s2, %s203_s9  ;;  %p207_p8 = scmp.lt.u32.totalorder %s203_s9, %s289_s2 }
  0x3d   :  { %p209_p9 = pnand %p207_p8, %p204_p7 }
  0x3f   :  { %212 = shalt.err (!%p209_p9)
}
  0x40   :  { %132 = dma.vmem_to_hbm [thread:$0]  %s130_s23, 32, %s289_s2, [#allocation7]  }
  0x41   :  { %215 = dma.done.wait [#allocation4], 32  }
  0x42   :  { %216 = vsyncadd [#allocation4], 4294967264 }
  0x43   :  { %217 = dma.done.wait [#allocation7], 32  }
  0x44   :  { %218 = vsyncadd [#allocation7], 4294967264 }
  0x45   :  { %139 = vsyncpa [#allocation3], 1 }
  0x46   :  { %140 = vsyncpa [#allocation4], 1 }
  0x47   :  { %141 = vsyncpa [#allocation7], 1 }

</bundles_post_ra>
